<compile_context>
chip_gen: v6e
topology: v6e:2x2x1
jax: 0.10.0
libtpu: 0.0.40
codegen_flags: <defaults>
</compile_context>

<pallas_src>
import functools
import numpy as np

import jax
import jax.numpy as jnp
from jax import lax
from jax.experimental import pallas as pl
from jax.experimental.pallas import tpu as pltpu

LANE = 128  # TPU vreg lane width


def _round_up(x, m):
    return (x + m - 1) // m * m


def _pick_batch_block(B, max_bt=4):
    """Largest divisor of B that is <= min(max_bt, B // 2).

    Keeps >= 2 grid steps along the batch axis whenever B > 1 (so both v7x
    TensorCores get work) while amortising per-grid-step overhead over
    several batch elements when B is larger.
    """
    if B <= 1:
        return 1
    target = max(1, min(max_bt, B // 2))
    for bt in range(target, 0, -1):
        if B % bt == 0:
            return bt
    return 1


def _attention_kernel(x1_ref, x2_ref, x2t_ref, wq_ref, wkt_ref, wv_ref,
                      out_ref, w_ref, *, bt, lm_valid):
    """One (batch-block, Lq-tile) step of single-head dot-product attention.

    Shapes seen by the kernel (bt = batch elems / step, Lq_t = Lq tile):
      x1_ref : (bt, Cq+1, Lq_t)  bf16   query features + ones row (bias)
      x2_ref : (bt, Cm+1, Lm_p)  bf16   memory features + ones row (for V)
      x2t_ref: (bt, Lm_p, Cm+1)  bf16   same, pre-transposed        (for K)
      wq_ref : (K,  Cq+1)        bf16   query weight|bias, 1/sqrt(K) folded in
      wkt_ref: (Cm+1, K)         bf16   key weight|bias, transposed
      wv_ref : (O,  Cm+1)        bf16   value weight|bias
      out_ref: (bt, O, Lq_t)     f32
      w_ref  : (bt, Lm_p, Lq_t)  bf16   attention weights
    All four matmuls per batch element are MXU-native (contract last dim of
    LHS with first dim of RHS) -> no XLU transposes inside the kernel.
    """
    wq = wq_ref[...]
    wkt = wkt_ref[...]
    wv = wv_ref[...]

    lm_p = x2t_ref.shape[1]
    need_mask = lm_valid < lm_p
    if need_mask:
        m_idx = lax.broadcasted_iota(jnp.int32, (lm_p, 1), 0)

    # Static unroll over the batch block keeps MXU pushes back-to-back and
    # amortises the per-grid-step overhead over bt batch elements.
    for b in range(bt):
        x1 = x1_ref[b]        # (Cq+1, Lq_t)
        x2 = x2_ref[b]        # (Cm+1, Lm_p)
        x2t = x2t_ref[b]      # (Lm_p, Cm+1)

        # projections (bias folded via the ones row; f32 accumulation)
        q = jnp.dot(wq, x1, preferred_element_type=jnp.float32)        # (K, Lq_t), pre-scaled
        kt = jnp.dot(x2t, wkt, preferred_element_type=jnp.float32)     # (Lm_p, K)
        v = jnp.dot(wv, x2, preferred_element_type=jnp.float32)        # (O, Lm_p)

        # scores over the memory axis (MXU-native; bf16 in, f32 out)
        u = jnp.dot(kt.astype(jnp.bfloat16), q.astype(jnp.bfloat16),
                    preferred_element_type=jnp.float32)                 # (Lm_p, Lq_t)
        if need_mask:
            # padded memory rows -> -inf -> zero softmax weight
            u = jnp.where(m_idx < lm_valid, u, -1e30)

        # numerically-stable softmax over the memory axis (f32 math)
        u = u - jnp.max(u, axis=0, keepdims=True)
        e = jnp.exp(u)
        # approx reciprocal (EUP slot); error ~1e-4 is below bf16 output precision
        w = e * pl.reciprocal(jnp.sum(e, axis=0, keepdims=True), approx=True)
        w_bf = w.astype(jnp.bfloat16)

        # weighted sum of values
        out = jnp.dot(v.astype(jnp.bfloat16), w_bf,
                      preferred_element_type=jnp.float32)               # (O, Lq_t)

        out_ref[b] = out
        w_ref[b] = w.astype(w_ref.dtype)


def attention_pallas(x1, x2, params, *, key_size, max_batch_block=4,
                     max_lq_block=512, w_dtype=jnp.bfloat16):
    """x1: (B, Cq, Lq), x2: (B, Cm, Lm) float32.  Returns (out, w) like Attention.forward.

    `w` is returned in bfloat16 by default (softmax math is f32) to halve the
    dominant HBM writeback; pass w_dtype=jnp.float32 for exact-dtype parity.
    """
    B, Cq, Lq = x1.shape
    B2, Cm, Lm = x2.shape
    assert B == B2 and Lm >= 1
    K = params["wq"].shape[0]
    O = params["wv"].shape[0]
    assert K == key_size

    # ---- tiling choices ------------------------------------------------------
    bt = _pick_batch_block(B, max_batch_block)
    Lm_p = _round_up(Lm, LANE)
    lq_block = min(_round_up(Lq, LANE), max_lq_block)

    def est_vmem(bt_, lq_t):
        io = (bt_ * (Cq + 1) * lq_t * 2          # x1 block (bf16)
              + 2 * bt_ * (Cm + 1) * Lm_p * 2    # x2 + x2^T blocks (bf16)
              + bt_ * O * lq_t * 4               # out block (f32)
              + bt_ * Lm_p * lq_t * 2)           # w block (bf16)
        tmp = 2 * bt_ * Lm_p * lq_t * 4          # f32 score/softmax temporaries
        return 2 * io + tmp                      # double-buffered pipeline

    BUDGET = 24 << 20                            # stay under v7x's 32 MiB scoped default
    while (est_vmem(bt, lq_block) > BUDGET and lq_block > LANE
           and lq_block % (2 * LANE) == 0):
        lq_block //= 2
    while est_vmem(bt, lq_block) > BUDGET and bt > 1:
        bt = _pick_batch_block(B, bt - 1)

    Lq_p = _round_up(Lq, lq_block)

    # ---- parameters: fold bias (ones row) and 1/sqrt(K) into the weights -----
    scale = 1.0 / np.sqrt(float(key_size))
    wq_full = (jnp.concatenate([params["wq"], params["bq"].reshape(K, 1)], axis=1)
               * scale).astype(jnp.bfloat16)                       # (K, Cq+1)
    wkt_full = jnp.concatenate([params["wk"], params["bk"].reshape(K, 1)],
                               axis=1).T.astype(jnp.bfloat16)      # (Cm+1, K)
    wv_full = jnp.concatenate([params["wv"], params["bv"].reshape(O, 1)],
                              axis=1).astype(jnp.bfloat16)         # (O, Cm+1)

    # ---- inputs: append ones row (bias), lane-pad to 128, cast to bf16 -------
    x1a = jnp.concatenate([x1, jnp.ones((B, 1, Lq), x1.dtype)], axis=1)
    x1p = jnp.pad(x1a, ((0, 0), (0, 0), (0, Lq_p - Lq))).astype(jnp.bfloat16)
    x2a = jnp.concatenate([x2, jnp.ones((B, 1, Lm), x2.dtype)], axis=1)
    x2p = jnp.pad(x2a, ((0, 0), (0, 0), (0, Lm_p - Lm))).astype(jnp.bfloat16)
    x2tp = jnp.transpose(x2p, (0, 2, 1))                           # (B, Lm_p, Cm+1)

    kernel = functools.partial(_attention_kernel, bt=bt, lm_valid=Lm)

    grid = (B // bt, Lq_p // lq_block)

    in_specs = [
        pl.BlockSpec((bt, Cq + 1, lq_block), lambda bi, qi: (bi, 0, qi)),   # x1
        pl.BlockSpec((bt, Cm + 1, Lm_p), lambda bi, qi: (bi, 0, 0)),        # x2 (for V)
        pl.BlockSpec((bt, Lm_p, Cm + 1), lambda bi, qi: (bi, 0, 0)),        # x2^T (for K)
        pl.BlockSpec((K, Cq + 1), lambda bi, qi: (0, 0)),                   # wq (scale+bias folded)
        pl.BlockSpec((Cm + 1, K), lambda bi, qi: (0, 0)),                   # wk^T (bias folded)
        pl.BlockSpec((O, Cm + 1), lambda bi, qi: (0, 0)),                   # wv (bias folded)
    ]
    out_specs = [
        pl.BlockSpec((bt, O, lq_block), lambda bi, qi: (bi, 0, qi)),        # out
        pl.BlockSpec((bt, Lm_p, lq_block), lambda bi, qi: (bi, 0, qi)),     # w
    ]
    out_shape = [
        jax.ShapeDtypeStruct((B, O, Lq_p), jnp.float32),
        jax.ShapeDtypeStruct((B, Lm_p, Lq_p), w_dtype),
    ]

    vmem_limit = int(min(max(est_vmem(bt, lq_block) * 5 // 4, 32 << 20), 48 << 20))

    out_p, w_p = pl.pallas_call(
        kernel,
        grid=grid,
        in_specs=in_specs,
        out_specs=out_specs,
        out_shape=out_shape,
        compiler_params=pltpu.CompilerParams(
            dimension_semantics=("parallel", "parallel"),
            vmem_limit_bytes=vmem_limit),
    )(x1p, x2p, x2tp, wq_full, wkt_full, wv_full)

    # Only slice when padding was actually added (each slice is an extra HBM pass).
    out = out_p if Lq_p == Lq else out_p[:, :, :Lq]
    w = w_p if (Lq_p == Lq and Lm_p == Lm) else w_p[:, :Lm, :Lq]
    return out, w


# ----------------------------- pure-JAX f32 reference ------------------------------
def _reference(x1, x2, p, key_size):
    q = jnp.einsum("kc,bcl->bkl", p["wq"], x1) + p["bq"][None, :, None]
    k = jnp.einsum("kc,bcl->bkl", p["wk"], x2) + p["bk"][None, :, None]
    v = jnp.einsum("oc,bcl->bol", p["wv"], x2) + p["bv"][None, :, None]
    u = jnp.einsum("bkq,bkm->bmq", q, k) / np.sqrt(float(key_size))
    w = jax.nn.softmax(u, axis=1)
    out = jnp.einsum("bom,bmq->boq", v, w)
    return out, w


if __name__ == "__main__":
    # module defaults: mem_in = query_in = key_size = output_size = 32
    mem_in = query_in = key_size = output_size = 32

    key = jax.random.PRNGKey(0)
    ks = jax.random.split(key, 8)

    params = {
        "wq": 0.1 * jax.random.normal(ks[0], (key_size, query_in), jnp.float32),
        "bq": 0.1 * jax.random.normal(ks[1], (key_size,), jnp.float32),
        "wk": 0.1 * jax.random.normal(ks[2], (key_size, mem_in), jnp.float32),
        "bk": 0.1 * jax.random.normal(ks[3], (key_size,), jnp.float32),
        "wv": 0.1 * jax.random.normal(ks[4], (output_size, mem_in), jnp.float32),
        "bv": 0.1 * jax.random.normal(ks[5], (output_size,), jnp.float32),
    }

    # Case 1 exercises lane padding + memory masking + wrapper slicing;
    # case 2 exercises batch blocking (bt=2) with aligned lengths (no slices).
    for (B, Lq, Lm) in [(2, 96, 72), (4, 128, 128)]:
        x1 = jax.random.normal(ks[6], (B, query_in, Lq), dtype=jnp.float32)
        x2 = jax.random.normal(ks[7], (B, mem_in, Lm), dtype=jnp.float32)

        out, w = attention_pallas(x1, x2, params, key_size=key_size)
        out = jax.block_until_ready(out)
        w = jax.block_until_ready(w)

        out_ref, w_ref = _reference(x1, x2, params, key_size)

        assert out.shape == (B, output_size, Lq), out.shape
        assert w.shape == (B, Lm, Lq), w.shape
        # bf16 MXU inputs / bf16 w output (f32 accumulation + f32 softmax math)
        assert jnp.allclose(out, out_ref, rtol=2e-2, atol=2e-2), "out mismatch"
        assert jnp.allclose(w.astype(jnp.float32), w_ref, rtol=2e-2, atol=2e-2), "w mismatch"

    print("KERNEL_OK")
</pallas_src>

<mosaic_0001>
module attributes {stable_mosaic.version = 11 : i64} {
  func.func @_attention_kernel(%arg0: i32, %arg1: i32, %arg2: memref<1x33x128xbf16, #tpu.memory_space<vmem>>, %arg3: memref<1x33x128xbf16, #tpu.memory_space<vmem>>, %arg4: memref<1x128x33xbf16, #tpu.memory_space<vmem>>, %arg5: memref<32x33xbf16, #tpu.memory_space<vmem>>, %arg6: memref<33x32xbf16, #tpu.memory_space<vmem>>, %arg7: memref<32x33xbf16, #tpu.memory_space<vmem>>, %arg8: memref<1x32x128xf32, #tpu.memory_space<vmem>>, %arg9: memref<1x128x128xbf16, #tpu.memory_space<vmem>>) attributes {dimension_semantics = [#tpu.dimension_semantics<parallel>, #tpu.dimension_semantics<parallel>], iteration_bounds = array<i64: 2, 1>, scalar_prefetch = 0 : i64, scratch_operands = 0 : i64, tpu.core_type = #tpu.core_type<tc>, window_params = [{transform_indices = @transform_0, window_bounds = array<i64: 1, 33, 128>}, {transform_indices = @transform_1, window_bounds = array<i64: 1, 33, 128>}, {transform_indices = @transform_2, window_bounds = array<i64: 1, 128, 33>}, {pipeline_mode = #tpu.pipeline_mode<synchronous>, transform_indices = @transform_3, window_bounds = array<i64: 32, 33>}, {pipeline_mode = #tpu.pipeline_mode<synchronous>, transform_indices = @transform_4, window_bounds = array<i64: 33, 32>}, {pipeline_mode = #tpu.pipeline_mode<synchronous>, transform_indices = @transform_5, window_bounds = array<i64: 32, 33>}, {transform_indices = @transform_6, window_bounds = array<i64: 1, 32, 128>}, {transform_indices = @transform_7, window_bounds = array<i64: 1, 128, 128>}]} {
    %c0 = arith.constant 0 : index
    %c0_0 = arith.constant 0 : index
    %0 = vector.load %arg5[%c0, %c0_0] : memref<32x33xbf16, #tpu.memory_space<vmem>>, vector<32x33xbf16>
    %c0_1 = arith.constant 0 : index
    %c0_2 = arith.constant 0 : index
    %1 = vector.load %arg6[%c0_1, %c0_2] : memref<33x32xbf16, #tpu.memory_space<vmem>>, vector<33x32xbf16>
    %c0_3 = arith.constant 0 : index
    %c0_4 = arith.constant 0 : index
    %2 = vector.load %arg7[%c0_3, %c0_4] : memref<32x33xbf16, #tpu.memory_space<vmem>>, vector<32x33xbf16>
    %3 = tpu.iota {dimensions = array<i32: 0>} : vector<128x1xi32>
    %c0_5 = arith.constant 0 : index
    %c0_6 = arith.constant 0 : index
    %c0_7 = arith.constant 0 : index
    %4 = vector.load %arg2[%c0_5, %c0_6, %c0_7] : memref<1x33x128xbf16, #tpu.memory_space<vmem>>, vector<1x33x128xbf16>
    %5 = vector.shape_cast %4 : vector<1x33x128xbf16> to vector<33x128xbf16>
    %c0_8 = arith.constant 0 : index
    %c0_9 = arith.constant 0 : index
    %c0_10 = arith.constant 0 : index
    %6 = vector.load %arg3[%c0_8, %c0_9, %c0_10] : memref<1x33x128xbf16, #tpu.memory_space<vmem>>, vector<1x33x128xbf16>
    %7 = vector.shape_cast %6 : vector<1x33x128xbf16> to vector<33x128xbf16>
    %c0_11 = arith.constant 0 : index
    %c0_12 = arith.constant 0 : index
    %c0_13 = arith.constant 0 : index
    %8 = vector.load %arg4[%c0_11, %c0_12, %c0_13] : memref<1x128x33xbf16, #tpu.memory_space<vmem>>, vector<1x128x33xbf16>
    %9 = vector.shape_cast %8 : vector<1x128x33xbf16> to vector<128x33xbf16>
    %cst = arith.constant dense<0.000000e+00> : vector<32x128xf32>
    %10 = tpu.matmul %0, %5, %cst {dimension_numbers = #tpu.dot_dimension_numbers<[1], [0], [0], [1], [0, 0, 1, 1], [], []>} : vector<32x33xbf16>, vector<33x128xbf16>, vector<32x128xf32> -> vector<32x128xf32>
    %cst_14 = arith.constant dense<0.000000e+00> : vector<128x32xf32>
    %11 = tpu.matmul %9, %1, %cst_14 {dimension_numbers = #tpu.dot_dimension_numbers<[1], [0], [0], [1], [0, 0, 1, 1], [], []>} : vector<128x33xbf16>, vector<33x32xbf16>, vector<128x32xf32> -> vector<128x32xf32>
    %cst_15 = arith.constant dense<0.000000e+00> : vector<32x128xf32>
    %12 = tpu.matmul %2, %7, %cst_15 {dimension_numbers = #tpu.dot_dimension_numbers<[1], [0], [0], [1], [0, 0, 1, 1], [], []>} : vector<32x33xbf16>, vector<33x128xbf16>, vector<32x128xf32> -> vector<32x128xf32>
    %13 = arith.truncf %11 : vector<128x32xf32> to vector<128x32xbf16>
    %14 = arith.truncf %10 : vector<32x128xf32> to vector<32x128xbf16>
    %cst_16 = arith.constant dense<0.000000e+00> : vector<128x128xf32>
    %15 = tpu.matmul %13, %14, %cst_16 {dimension_numbers = #tpu.dot_dimension_numbers<[1], [0], [0], [1], [0, 0, 1, 1], [], []>} : vector<128x32xbf16>, vector<32x128xbf16>, vector<128x128xf32> -> vector<128x128xf32>
    %c72_i32 = arith.constant 72 : i32
    %16 = vector.broadcast %c72_i32 : i32 to vector<128x1xi32>
    %17 = arith.cmpi slt, %3, %16 : vector<128x1xi32>
    %cst_17 = arith.constant -1.000000e+30 : f32
    %18 = vector.shape_cast %17 : vector<128x1xi1> to vector<128x1xi1>
    %19 = vector.broadcast %18 : vector<128x1xi1> to vector<128x128xi1>
    %20 = vector.broadcast %cst_17 : f32 to vector<128x128xf32>
    %21 = arith.select %19, %15, %20 : vector<128x128xi1>, vector<128x128xf32>
    %cst_18 = arith.constant dense<0xFF800000> : vector<128xf32>
    %22 = vector.multi_reduction <maximumf>, %21, %cst_18 [0] : vector<128x128xf32> to vector<128xf32>
    %23 = vector.shape_cast %22 : vector<128xf32> to vector<1x128xf32>
    %24 = vector.broadcast %23 : vector<1x128xf32> to vector<128x128xf32>
    %25 = arith.subf %21, %24 : vector<128x128xf32>
    %26 = math.exp %25 : vector<128x128xf32>
    %cst_19 = arith.constant dense<0.000000e+00> : vector<128xf32>
    %27 = vector.multi_reduction <add>, %26, %cst_19 [0] : vector<128x128xf32> to vector<128xf32>
    %28 = vector.shape_cast %27 : vector<128xf32> to vector<1x128xf32>
    %29 = tpu.reciprocal %28 {approx = true} : vector<1x128xf32> -> vector<1x128xf32>
    %30 = vector.broadcast %29 : vector<1x128xf32> to vector<128x128xf32>
    %31 = arith.mulf %26, %30 : vector<128x128xf32>
    %32 = arith.truncf %31 : vector<128x128xf32> to vector<128x128xbf16>
    %33 = arith.truncf %12 : vector<32x128xf32> to vector<32x128xbf16>
    %cst_20 = arith.constant dense<0.000000e+00> : vector<32x128xf32>
    %34 = tpu.matmul %33, %32, %cst_20 {dimension_numbers = #tpu.dot_dimension_numbers<[1], [0], [0], [1], [0, 0, 1, 1], [], []>} : vector<32x128xbf16>, vector<128x128xbf16>, vector<32x128xf32> -> vector<32x128xf32>
    %c0_21 = arith.constant 0 : index
    %c0_22 = arith.constant 0 : index
    %c0_23 = arith.constant 0 : index
    %35 = vector.load %arg8[%c0_21, %c0_22, %c0_23] : memref<1x32x128xf32, #tpu.memory_space<vmem>>, vector<1x32x128xf32>
    %36 = vector.shape_cast %35 : vector<1x32x128xf32> to vector<32x128xf32>
    %37 = vector.shape_cast %34 : vector<32x128xf32> to vector<1x32x128xf32>
    tpu.vector_store %arg8[%c0_21, %c0_22, %c0_23], %37 {strides = array<i32>} : memref<1x32x128xf32, #tpu.memory_space<vmem>>, vector<1x32x128xf32>,
    %38 = arith.truncf %31 : vector<128x128xf32> to vector<128x128xbf16>
    %c0_24 = arith.constant 0 : index
    %c0_25 = arith.constant 0 : index
    %c0_26 = arith.constant 0 : index
    %39 = vector.load %arg9[%c0_24, %c0_25, %c0_26] : memref<1x128x128xbf16, #tpu.memory_space<vmem>>, vector<1x128x128xbf16>
    %40 = vector.shape_cast %39 : vector<1x128x128xbf16> to vector<128x128xbf16>
    %41 = vector.shape_cast %38 : vector<128x128xbf16> to vector<1x128x128xbf16>
    tpu.vector_store %arg9[%c0_24, %c0_25, %c0_26], %41 {strides = array<i32>} : memref<1x128x128xbf16, #tpu.memory_space<vmem>>, vector<1x128x128xbf16>,
    return
  }
  func.func @transform_0(%arg0: i32, %arg1: i32) -> (i32, i32, i32) {
    %c0_i32 = arith.constant 0 : i32
    %c0_i32_0 = arith.constant 0 : i32
    return %arg0, %c0_i32, %arg1 : i32, i32, i32
  }
  func.func @transform_1(%arg0: i32, %arg1: i32) -> (i32, i32, i32) {
    %c0_i32 = arith.constant 0 : i32
    %c0_i32_0 = arith.constant 0 : i32
    %c0_i32_1 = arith.constant 0 : i32
    return %arg0, %c0_i32, %c0_i32_0 : i32, i32, i32
  }
  func.func @transform_2(%arg0: i32, %arg1: i32) -> (i32, i32, i32) {
    %c0_i32 = arith.constant 0 : i32
    %c0_i32_0 = arith.constant 0 : i32
    %c0_i32_1 = arith.constant 0 : i32
    return %arg0, %c0_i32, %c0_i32_0 : i32, i32, i32
  }
  func.func @transform_3(%arg0: i32, %arg1: i32) -> (i32, i32) {
    %c0_i32 = arith.constant 0 : i32
    %c0_i32_0 = arith.constant 0 : i32
    %c0_i32_1 = arith.constant 0 : i32
    return %c0_i32, %c0_i32_0 : i32, i32
  }
  func.func @transform_4(%arg0: i32, %arg1: i32) -> (i32, i32) {
    %c0_i32 = arith.constant 0 : i32
    %c0_i32_0 = arith.constant 0 : i32
    %c0_i32_1 = arith.constant 0 : i32
    return %c0_i32, %c0_i32_0 : i32, i32
  }
  func.func @transform_5(%arg0: i32, %arg1: i32) -> (i32, i32) {
    %c0_i32 = arith.constant 0 : i32
    %c0_i32_0 = arith.constant 0 : i32
    %c0_i32_1 = arith.constant 0 : i32
    return %c0_i32, %c0_i32_0 : i32, i32
  }
  func.func @transform_6(%arg0: i32, %arg1: i32) -> (i32, i32, i32) {
    %c0_i32 = arith.constant 0 : i32
    %c0_i32_0 = arith.constant 0 : i32
    return %arg0, %c0_i32, %arg1 : i32, i32, i32
  }
  func.func @transform_7(%arg0: i32, %arg1: i32) -> (i32, i32, i32) {
    %c0_i32 = arith.constant 0 : i32
    %c0_i32_0 = arith.constant 0 : i32
    return %arg0, %c0_i32, %arg1 : i32, i32, i32
  }
}

</mosaic_0001>

<bundles_post_ra>
// kernel: tpu_custom_call.1
= control target key start
LH: loop header
LB: loop body
LE: loop exit
PB: predicated region body
PF: predicated region fallthrough
CT: control target
= control target key end

     0   :  { %13 = vsyncpa [#allocation3], 0  ;;  %s2127_s0 = inlined_call_operand.vmem [shape: bf16[2,33,128], index: 0, kind: input, shape index: {}]   ;;  %s2128_s1 = inlined_call_operand.vmem [shape: bf16[2,33,128], index: 1, kind: input, shape index: {}]   ;;  %s2129_s2 = inlined_call_operand.vmem [shape: bf16[2,128,33], index: 2, kind: input, shape index: {}]   ;;  %s2130_s3 = inlined_call_operand.vmem [shape: bf16[32,33], index: 3, kind: input, shape index: {}]   ;;  %s2131_s4 = inlined_call_operand.vmem [shape: bf16[33,32], index: 4, kind: input, shape index: {}]   ;;  %s2132_s5 = inlined_call_operand.vmem [shape: bf16[32,33], index: 5, kind: input, shape index: {}]   ;;  %s2133_s6 = inlined_call_operand.hbm [shape: f32[2,32,128], index: 6, kind: output, shape index: {0}]   ;;  %s2134_s7 = inlined_call_operand.hbm [shape: bf16[2,128,128], index: 7, kind: output, shape index: {1}]  }
   0x1   :  { %15 = vsyncpa [#allocation3 + $0x1], 0 }
   0x2   :  { %16 = vsyncpa [#allocation5], 0 }
   0x3   :  { %18 = vsyncpa [#allocation5 + $0x1], 0  ;;  %s1901_s24 = smov 0   ;;  %s1903_s25 = smov 0  }
   0x4   :  { %s1905_s26 = smov 0   ;;  %s1907_s27 = smov 0  }
   0x5   :  { %s1909_s28 = smov 0   ;;  %s1911_s29 = smov 0  }
   0x6 LB: > { %s1372_s30 = sadd.s32 4294967295, %s1852_s29   ;;  %s1373_s8 = sadd.s32 4294967294, %s1852_s29   ;;  %s1852_s29 = sphi %s1911_s29, %s24_s29   ;;  %s1848_s28 = sphi %s1909_s28, %s2141_s28   ;;  %s1844_s27 = sphi %s1907_s27, %s2140_s27   ;;  %s1840_s26 = sphi %s1905_s26, %s2139_s26   ;;  %s1836_s25 = sphi %s1903_s25, %s2138_s25   ;;  %s1832_s24 = sphi %s1901_s24, %s2137_s24  }
   0x7   : > { %s36_s9 = sadd.s32 1, %s1848_s28  ;;  %s188_s10 = sadd.s32 1, %s1840_s26 }
   0x8   : > { %p38_p0 = scmp.ge.s32.totalorder %s36_s9, 2  ;;  %p198_p1 = scmp.ne.s32.totalorder %s1840_s26, %s1836_s25 }
   0x9   : > { %p199_p2 = scmp.eq.s32.totalorder %s1372_s30, 1  ;;  %p204_p3 = scmp.ne.s32.totalorder %s1836_s25, %s1832_s24 }
   0xa   : > { %s2143_s9 = smov (%p38_p0, %s36_s9), 0  ;;  %p205_p5 = scmp.eq.s32.totalorder %s1373_s8, 1 }
   0xb   : > { %p1941_p4 = por %p199_p2, %p198_p1  ;;  %s183_s12 = ssub.s32 %s1848_s28, %s2143_s9 }
   0xc   : > { %p1376_p6 = scmp.ge.s32.totalorder %s1852_s29, 1  ;;  %p186_p7 = scmp.eq.s32.totalorder %s183_s12, 0 }
   0xd   : > { %p1948_p8 = por %p205_p5, %p204_p3  ;;  %p287_p9 = scmp.lt.s32.totalorder %s1852_s29, 3 }
   0xe   : > { %s1954_s14 = scalar_select %p186_p7, %s1840_s26, %s188_s10  }
   0xf   : > { %p288_p10 = pnand %p1376_p6, %p287_p9 }
  0x10   : > { %p337_p11 = scmp.lt.s32.totalorder (!%p288_p10), %s1844_s27, 1  ;;  %s1466_s18 = sshll.u32 (!%p288_p10), %s1844_s27, 10 }
  0x11   : > { %291 = sbr.rel (%p288_p10) target bundleno = 804 (0x324), region = 44  ;;  %s1855_s8 = smov (!%p288_p10), [#allocation4]  }
  0x12   : > { %s1750_s12 = sshll.u32 (!%p288_p10), %s1855_s8, 4  ;;  %s1751_s12 = int_to_ptr.vmem [resolvable:$false] %s1750_s12 }
  0x13   : > { %s1752_s15 = scalar_lea.vmem (!%p288_p10), %s1751_s12, 2048 }
  0x16   : > { %vm444_vm0 = vcmask 1040384   ;;  %v1854_v0 = vmov 0   ;;  %v1703_v2 = vld [vmem:[%s2131_s4 + $0x10] ss:$0 sps:$4 sm:$0x11]   ;;  %s338_s17 = scalar_select %p337_p11, %s1844_s27, 1 }
  0x17   : > { %v446_v1 = vsel %vm444_vm0, 65535, %v1854_v0  ;;  %v1705_v3 = vld [vmem:[%s2131_s4 + $0x8] sm:$0xff]   ;;  %vm437_vm1 = vcmask 269312   ;;  %v1710_v5 = vld [vmem:[%s2130_s3] sm:$0xff]   ;;  %vm771_vm2 = vcmask 261120  }
  0x18   : > { %v579_v4 = vand.u32 %v1703_v2, %v446_v1  ;;  %s1637_s22 = smul.u32 20, %s338_s17  ;;  %s1448_s23 = sshll.u32 %s338_s17, 6  ;;  %1561 = vmatprep.mubr.msk.bf16.mxu0 %vm437_vm1, %v1710_v5  ;;  %v1707_v8 = vld [vmem:[%s2131_s4] sm:$0xff]   ;;  %v1712_v16 = vld [vmem:[%s2130_s3 + $0x8] sm:$0xff]  }
  0x19   : > { %s1970_s10 = scalar_lea.vmem %s2129_s2, %s1448_s23  ;;  %v1720_v22 = vld [vmem:[%s2132_s5] sm:$0xff]   ;;  %v1721_v23 = vld [vmem:[%s2132_s5 + $0x8] sm:$0xff]  }
  0x1a   : > { %1565 = vmatprep.subr.bf16.mxu1 %v579_v4  ;;  %s344_s16 = scalar_lea.vmem %s2127_s0, %s1637_s22  ;;  %v1709_v6 = vld [vmem:[%s1970_s10] sm:$0xff]   ;;  %s349_s21 = scalar_lea.vmem %s2128_s1, %s1637_s22  ;;  %v1711_v12 = vld [vmem:[%s1970_s10 + $0x8] sm:$0xff]   ;;  %v1713_v13 = vld [vmem:[%s1970_s10 + $0x10] sm:$0xff]  }
  0x1b   : > { %1566 = vmatpush3.bf16.msra.mxu1 %v579_v4  ;;  %v1704_v7 = vld [vmem:[%s344_s16 + $0x10] ss:$0 sps:$4 sm:$0x11]   ;;  %1571 = vmatprep.mubr.msk.bf16.mxu1 %vm437_vm1, %v1709_v6  ;;  %v1706_v10 = vld [vmem:[%s344_s16 + $0x8] sm:$0xff]   ;;  %v1708_v11 = vld [vmem:[%s344_s16] sm:$0xff]  }
  0x1c   : > { %1567 = vmatprep.subr.bf16.mxu1 %v1705_v3  ;;  %v448_v9 = vand.u32 %v1704_v7, %v446_v1  ;;  %v1717_v14 = vld [vmem:[%s349_s21 + $0x10] ss:$0 sps:$4 sm:$0x11]   ;;  %v1714_v17 = vld [vmem:[%s1970_s10 + $0x18] sm:$0xff]   ;;  %v1718_v18 = vld [vmem:[%s349_s21 + $0x8] sm:$0xff]  }
  0x1d   : > { %v710_v15 = vand.u32 %v1717_v14, %v446_v1  ;;  %v1715_v19 = vld [vmem:[%s1970_s10 + $0x20] sm:$0xff]   ;;  %v1716_v21 = vld [vmem:[%s1970_s10 + $0x28] sm:$0xff]   ;;  %v1722_v24 = vld [vmem:[%s1970_s10 + $0x30] sm:$0xff]  }
  0x1e   : > { %1555 = vmatprep.subr.bf16.mxu0 %v448_v9  ;;  %v1719_v20 = vld [vmem:[%s349_s21] sm:$0xff]   ;;  %v1723_v25 = vld [vmem:[%s1970_s10 + $0x38] sm:$0xff]   ;;  %s2025_s10 = sand.u32 1, %s1836_s25   ;;  %s2045_s21 = scalar_lea.hbm %s2134_s7, %s1466_s18 }
  0x1f   : > { %1568 = vmatpush3.bf16.msra.mxu1 %v1705_v3  ;;  %1556 = vmatpush3.bf16.msra.mxu0 %v448_v9  ;;  %s1378_s16 = sshll.u32 %s2025_s10, 6  ;;  %s1205_s30 = scalar_lea.sflag [#allocation5], %s2025_s10 }
  0x20   : > { %1569 = vmatprep.subr.bf16.mxu1 %v1707_v8  ;;  %1557 = vmatprep.subr.bf16.mxu0 %v1706_v10  ;;  %s2028_s17 = scalar_lea.vmem [#allocation4], %s1378_s16 }
  0x21   : > { %s1236_s23 = sshll.u32 %s2028_s17, 4  ;;  %s2048_s23 = int_to_ptr.vmem [resolvable:$true] %s1236_s23 }
  0x22   : > { %s1746_s22 = scalar_lea.vmem %s2048_s23, 1024  ;;  %p1753_p1 = scmp.lt.s32.totalorder %s2048_s23, %s1751_s12 }
  0x23   : > { %1570 = vmatpush3.bf16.msra.mxu1 %v1707_v8  ;;  %1558 = vmatpush3.bf16.msra.mxu0 %v1706_v10  ;;  %p1747_p12 = scmp.ne.s32.totalorder %s2048_s23, %s1746_s22  ;;  %p1754_p2 = scmp.lt.s32.totalorder %s1752_s15, %s1746_s22 }
  0x24   : > { %1559 = vmatprep.subr.bf16.mxu0 %v1708_v11 }
  0x25   : > { %p1748_p13 = pnand %p1747_p12, %p1941_p4  ;;  %p1755_p3 = por %p1754_p2, %p1753_p1 }
  0x26   : > { %1572 = vmatmul.mubr.msk.bf16.vlgmr.msra.gmra.mxu1 %vm437_vm1, %v1711_v12 }
  0x27   : > { %1575 = vmatprep.mubr.msk.bf16.mxu1 %vm437_vm1, %v1713_v13  ;;  %1560 = vmatpush3.bf16.msra.mxu0 %v1708_v11  ;;  %p1749_p0 = pneg %p1748_p13 }
  0x28   : > { %1587 = vmatprep.subr.bf16.mxu0 %v710_v15 }
  0x29   : > { %p1756_p5 = pnand %p1755_p3, %p1749_p0 }
  0x2a   : > { %1562 = vmatmul.mubr.msk.bf16.vlgmr.msra.gmra.mxu0 %vm437_vm1, %v1712_v16 }
  0x2b   : > { %1588 = vmatpush3.bf16.msra.mxu0 %v710_v15  ;;  %1593 = vmatprep.mubr.msk.bf16.mxu0 %vm437_vm1, %v1720_v22 }
  0x2c   : > { %1589 = vmatprep.subr.bf16.mxu0 %v1718_v18 }
  0x2e   : > { %1576 = vmatmul.mubr.msk.bf16.gmra.mxu1 %vm437_vm1, %v1714_v17 }
  0x2f   : > { %1579 = vmatprep.mubr.msk.bf16.mxu1 %vm437_vm1, %v1715_v19  ;;  %1590 = vmatpush3.bf16.msra.mxu0 %v1718_v18 }
  0x30   : > { %1591 = vmatprep.subr.bf16.mxu0 %v1719_v20 }
  0x33   : > { %1592 = vmatpush3.bf16.msra.mxu0 %v1719_v20 }
  0x36   : > { %1580 = vmatmul.mubr.msk.bf16.gmra.mxu1 %vm437_vm1, %v1716_v21  ;;  %1594 = vmatmul.mubr.msk.bf16.vlgmr.msra.gmra.mxu0 %vm437_vm1, %v1721_v23 }
  0x37   : > { %1583 = vmatprep.mubr.msk.bf16.mxu1 %vm437_vm1, %v1722_v24 }
  0x3e   : > { %1584 = vmatmul.mubr.msk.bf16.gmra.mxu1 %vm437_vm1, %v1723_v25 }
  0xe6   : > { %v1573_v26 = vpop.f32.mrf.mxu1 }
  0xe8   : > { %v615_v27 = vpop.f32.mrf.mxu1 }
  0xea   : > { %v1574_v28 = vpop.f32.mrf.mxu1  ;;  %v1563_v29 = vpop.f32.mrf.mxu0 }
  0xeb   : > { %v762_v44 = vpack.c.bf16 %v1574_v28, %v1573_v26 }
  0xec   : > { %v618_v30 = vpop.f32.mrf.mxu1  ;;  %v484_v32 = vpop.f32.mrf.mxu0 }
  0xed   : > { %v761_v31 = vpack.c.bf16 %v618_v30, %v615_v27 }
  0xee   : > { %v1577_v33 = vpop.f32.mrf.mxu1  ;;  %v1564_v34 = vpop.f32.mrf.mxu0 }
  0xef   : > { %1601 = vmatprep.mubr.msk.bf16.mxu0 %vm771_vm2, %v761_v31  ;;  %v770_v36 = vpack.c.bf16 %v1564_v34, %v1563_v29 }
  0xf0   : > { %v631_v35 = vpop.f32.mrf.mxu1  ;;  %v487_v37 = vpop.f32.mrf.mxu0 }
  0xf1   : > { %v769_v39 = vpack.c.bf16 %v487_v37, %v484_v32  ;;  %1597 = vmatprep.subr.bf16.mxu0 %v770_v36 }
  0xf2   : > { %v1578_v38 = vpop.f32.mrf.mxu1  ;;  %1598 = vmatpush3.bf16.msra.mxu0 %v770_v36 }
  0xf3   : > { %1599 = vmatprep.subr.bf16.mxu0 %v769_v39  ;;  %v764_v48 = vpack.c.bf16 %v1578_v38, %v1577_v33 }
  0xf4   : > { %v634_v40 = vpop.f32.mrf.mxu1 }
  0xf5   : > { %v763_v42 = vpack.c.bf16 %v634_v40, %v631_v35 }
  0xf6   : > { %v1581_v41 = vpop.f32.mrf.mxu1  ;;  %1600 = vmatpush3.bf16.msra.mxu0 %v769_v39  ;;  %v2016_v50 = vpop.f32.mrf.mxu0 }
  0xf8   : > { %v647_v43 = vpop.f32.mrf.mxu1  ;;  %v746_v51 = vpop.f32.mrf.mxu0 }
  0xf9   : > { %1602 = vmatmul.mubr.msk.bf16.vlgmr.msra.gmra.mxu0 %vm771_vm2, %v762_v44 }
  0xfa   : > { %v1582_v45 = vpop.f32.mrf.mxu1  ;;  %1605 = vmatprep.mubr.msk.bf16.mxu0 %vm771_vm2, %v763_v42  ;;  %v2018_v52 = vpop.f32.mrf.mxu0 }
  0xfb   : > { %v766_v49 = vpack.c.bf16 %v1582_v45, %v1581_v41  ;;  %v1073_v53 = vpack.c.bf16 %v2018_v52, %v2016_v50 }
  0xfc   : > { %v650_v46 = vpop.f32.mrf.mxu1  ;;  %v749_v54 = vpop.f32.mrf.mxu0 }
  0xfd   : > { %v765_v47 = vpack.c.bf16 %v650_v46, %v647_v43  ;;  %v1072_v55 = vpack.c.bf16 %v749_v54, %v746_v51 }
  0xfe   : > { %v1585_v57 = vpop.f32.mrf.mxu1 }
  0xff   : > { %1633 = vmatprep.mubr.bf16.mxu1 %v1072_v55 }
 0x100   : > { %v663_v59 = vpop.f32.mrf.mxu1 }
 0x101   : > { %1606 = vmatmul.mubr.msk.bf16.gmra.mxu0 %vm771_vm2, %v764_v48 }
 0x102   : > { %1609 = vmatprep.mubr.msk.bf16.mxu0 %vm771_vm2, %v765_v47  ;;  %v1586_v61 = vpop.f32.mrf.mxu1 }
 0x103   : > { %v768_v63 = vpack.c.bf16 %v1586_v61, %v1585_v57 }
 0x104   : > { %v666_v0 = vpop.f32.mrf.mxu1 }
 0x105   : > { %v767_v2 = vpack.c.bf16 %v666_v0, %v663_v59 }
 0x109   : > { %1610 = vmatmul.mubr.msk.bf16.gmra.mxu0 %vm771_vm2, %v766_v49 }
 0x10a   : > { %1613 = vmatprep.mubr.msk.bf16.mxu0 %vm771_vm2, %v767_v2 }
 0x111   : > { %1614 = vmatmul.mubr.msk.bf16.gmra.mxu0 %vm771_vm2, %v768_v63 }
 0x1b9   : > { %v1603_v56 = vpop.f32.mrf.mxu0 }
 0x1bb   : > { %v830_v58 = vpop.f32.mrf.mxu0 }
 0x1bd   : > { %v1604_v60 = vpop.f32.mrf.mxu0 }
 0x1bf   : > { %v833_v62 = vpop.f32.mrf.mxu0 }
 0x1c1   : > { %v1607_v1 = vpop.f32.mrf.mxu0 }
 0x1c2   : > { %v959_v5 = vmax.f32 %v1603_v56, %v1607_v1 }
 0x1c3   : > { %v846_v3 = vpop.f32.mrf.mxu0 }
 0x1c4   : > { %v963_v11 = vmax.f32 %v959_v5, -1e+30  ;;  %v957_v12 = vmax.f32 %v830_v58, %v846_v3 }
 0x1c5   : > { %v1608_v4 = vpop.f32.mrf.mxu0 }
 0x1c6   : > { %v960_v6 = vmax.f32 %v1604_v60, %v1608_v4  ;;  %v967_v18 = vmax.f32 %v963_v11, -1e+30 }
 0x1c7   : > { %v849_v7 = vpop.f32.mrf.mxu0 }
 0x1c8   : > { %v964_v8 = vmax.f32 %v960_v6, -1e+30  ;;  %v958_v9 = vmax.f32 %v833_v62, %v849_v7 }
 0x1c9   : > { %v1611_v10 = vpop.f32.mrf.mxu0 }
 0x1ca   : > { %v962_v13 = vmax.f32 %v958_v9, -1e+30  ;;  %v968_v15 = vmax.f32 %v964_v8, -1e+30 }
 0x1cb   : > { %v862_v14 = vpop.f32.mrf.mxu0 }
 0x1cc   : > { %v961_v16 = vmax.f32 %v957_v12, %v862_v14  ;;  %v966_v19 = vmax.f32 %v962_v13, -1e+30  ;;  %v970_v22 = vmax.f32 %v967_v18, %v968_v15 }
 0x1cd   : > { %v1612_v17 = vpop.f32.mrf.mxu0 }
 0x1ce   : > { %v965_v20 = vmax.f32 %v961_v16, -1e+30 }
 0x1cf   : > { %v865_v21 = vpop.f32.mrf.mxu0 }
 0x1d0   : > { %v969_v23 = vmax.f32 %v965_v20, %v966_v19 }
 0x1d2   : > { %v971_v24 = vmax.f32 %v969_v23, %v970_v22 }
 0x1d4   : > { %v972_v25 = vrot.slane %v971_v24, 4 }
 0x1d6   : > { %v973_v26 = vmax.f32 %v971_v24, %v972_v25 }
 0x1d8   : > { %v974_v27 = vrot.slane %v973_v26, 2 }
 0x1da   : > { %v975_v28 = vmax.f32 %v973_v26, %v974_v27 }
 0x1dc   : > { %v976_v29 = vrot.slane %v975_v28, 1 }
 0x1de   : > { %v977_v30 = vmax.f32 %v975_v28, %v976_v29 }
 0x1e0   : > { %v978_v31 = vsub.f32 %v830_v58, %v977_v30  ;;  %v979_v32 = vsub.f32 %v833_v62, %v977_v30  ;;  %v980_v33 = vsub.f32 %v1603_v56, %v977_v30  ;;  %v981_v34 = vsub.f32 %v1604_v60, %v977_v30 }
 0x1e1   : > { %v982_v37 = vsub.f32 %v846_v3, %v977_v30  ;;  %v983_v39 = vsub.f32 %v849_v7, %v977_v30  ;;  %v984_v41 = vsub.f32 %v1607_v1, %v977_v30  ;;  %v985_v43 = vsub.f32 %v1608_v4, %v977_v30 }
 0x1e2   : > { %v994_v35 = vmul.f32 1.442695, %v978_v31  ;;  %v996_v36 = vmul.f32 1.442695, %v979_v32  ;;  %v998_v38 = vmul.f32 1.442695, %v980_v33  ;;  %v986_v45 = vsub.f32 %v862_v14, %v977_v30 }
 0x1e3   : > { %v1000_v40 = vmul.f32 1.442695, %v981_v34  ;;  %v1002_v42 = vmul.f32 1.442695, %v982_v37  ;;  %v1004_v44 = vmul.f32 1.442695, %v983_v39 }
 0x1e4   : > { %1724 = vpow2.f32 %v994_v35  ;;  %v1006_v46 = vmul.f32 1.442695, %v984_v41  ;;  %v987_v47 = vsub.f32 -1e+30, %v977_v30  ;;  %v1008_v48 = vmul.f32 1.442695, %v985_v43 }
 0x1e5   : > { %1726 = vpow2.f32 %v996_v36  ;;  %v1010_v49 = vmul.f32 1.442695, %v986_v45 }
 0x1e6   : > { %1728 = vpow2.f32 %v998_v38  ;;  %v1012_v54 = vmul.f32 1.442695, %v987_v47  ;;  %v1615_v38 = vpop.f32.mrf.mxu0 }
 0x1e7   : > { %1730 = vpow2.f32 %v1000_v40 }
 0x1e8   : > { %1732 = vpow2.f32 %v1002_v42  ;;  %v878_v39 = vpop.f32.mrf.mxu0 }
 0x1e9   : > { %1734 = vpow2.f32 %v1004_v44 }
 0x1ea   : > { %1736 = vpow2.f32 %v1006_v46  ;;  %v1616_v40 = vpop.f32.mrf.mxu0 }
 0x1eb   : > { %1738 = vpow2.f32 %v1008_v48 }
 0x1ec   : > { %1740 = vpow2.f32 %v1010_v49  ;;  %v881_v41 = vpop.f32.mrf.mxu0 }
 0x1ed   : > { %1742 = vpow2.f32 %v1012_v54 }
 0x1f1   : > { %v1725_v51 = vpop.eup %1724 }
 0x1f2   : > { %v1727_v55 = vpop.eup %1726 }
 0x1f3   : > { %v1026_v56 = vadd.f32 %v1727_v55, %v1725_v51  ;;  %v1729_v57 = vpop.eup %1728 }
 0x1f4   : > { %v1731_v59 = vpop.eup %1730 }
 0x1f5   : > { %v1027_v58 = vadd.f32 %v1729_v57, %v1026_v56  ;;  %v1733_v61 = vpop.eup %1732 }
 0x1f6   : > { %v1735_v63 = vpop.eup %1734 }
 0x1f7   : > { %v1028_v60 = vadd.f32 %v1731_v59, %v1027_v58  ;;  %v1737_v1 = vpop.eup %1736 }
 0x1f8   : > { %v1739_v3 = vpop.eup %1738 }
 0x1f9   : > { %v1029_v62 = vadd.f32 %v1733_v61, %v1028_v60  ;;  %v1741_v5 = vpop.eup %1740 }
 0x1fa   : > { %v1743_v7 = vpop.eup %1742 }
 0x1fb   : > { %v1030_v0 = vadd.f32 %v1735_v63, %v1029_v62 }
 0x1fd   : > { %v1031_v2 = vadd.f32 %v1737_v1, %v1030_v0 }
 0x1ff   : > { %v1032_v4 = vadd.f32 %v1739_v3, %v1031_v2 }
 0x201   : > { %v1033_v6 = vadd.f32 %v1741_v5, %v1032_v4 }
 0x203   : > { %v1034_v8 = vadd.f32 %v1743_v7, %v1033_v6 }
 0x205   : > { %v1035_v9 = vadd.f32 %v1743_v7, %v1034_v8 }
 0x207   : > { %v1036_v10 = vadd.f32 %v1743_v7, %v1035_v9 }
 0x209   : > { %v1037_v11 = vadd.f32 %v1743_v7, %v1036_v10 }
 0x20b   : > { %v1038_v12 = vadd.f32 %v1743_v7, %v1037_v11 }
 0x20d   : > { %v1039_v13 = vadd.f32 %v1743_v7, %v1038_v12 }
 0x20f   : > { %v1040_v14 = vadd.f32 %v1743_v7, %v1039_v13 }
 0x211   : > { %v1041_v15 = vrot.slane %v1040_v14, 4 }
 0x213   : > { %v1042_v16 = vadd.f32 %v1041_v15, %v1040_v14 }
 0x215   : > { %v1043_v17 = vrot.slane %v1042_v16, 2 }
 0x217   : > { %v1044_v18 = vadd.f32 %v1043_v17, %v1042_v16 }
 0x219   : > { %v1045_v19 = vrot.slane %v1044_v18, 1 }
 0x21b   : > { %v1046_v20 = vadd.f32 %v1045_v19, %v1044_v18 }
 0x21d   : > { %1744 = vrcp.f32 %v1046_v20 }
 0x22a   : > { %v1745_v21 = vpop.eup %1744 }
 0x22b   : > { %v1057_v22 = vmul.f32 %v1745_v21, %v1743_v7  ;;  %v1056_v23 = vmul.f32 %v1745_v21, %v1741_v5  ;;  %v1054_v24 = vmul.f32 %v1745_v21, %v1737_v1  ;;  %v1055_v25 = vmul.f32 %v1745_v21, %v1739_v3 }
 0x22c   : > { %v1052_v26 = vmul.f32 %v1745_v21, %v1733_v61  ;;  %v1053_v27 = vmul.f32 %v1745_v21, %v1735_v63  ;;  %v1050_v28 = vmul.f32 %v1745_v21, %v1729_v57  ;;  %v1051_v29 = vmul.f32 %v1745_v21, %v1731_v59 }
 0x22d   : > { %v1069_v30 = vpack.c.bf16 %v1057_v22, %v1057_v22  ;;  %v1068_v31 = vpack.c.bf16 %v1057_v22, %v1056_v23  ;;  %v1067_v32 = vpack.c.bf16 %v1055_v25, %v1054_v24  ;;  %v1048_v33 = vmul.f32 %v1745_v21, %v1725_v51 }
 0x22e   : > { %v1066_v34 = vpack.c.bf16 %v1053_v27, %v1052_v26  ;;  %v1065_v35 = vpack.c.bf16 %v1051_v29, %v1050_v28  ;;  %v1049_v36 = vmul.f32 %v1745_v21, %v1727_v55 }
 0x22f   : > { %1617 = vmatprep.subr.bf16.mxu1 %v1069_v30  ;;  %1510 = vst [vmem:[%s2028_s17 + $0x20] sm:$0xff] %v1068_v31   ;;  %1511 = vst [vmem:[%s2028_s17 + $0x28] sm:$0xff] %v1069_v30  }
 0x230   : > { %1512 = vst [vmem:[%s2028_s17 + $0x30] sm:$0xff] %v1069_v30   ;;  %1513 = vst [vmem:[%s2028_s17 + $0x38] sm:$0xff] %v1069_v30   ;;  %1618 = vmatpush3.bf16.msra.mxu1 %v1069_v30  ;;  %v1064_v37 = vpack.c.bf16 %v1049_v36, %v1048_v33 }
 0x231   : > { %1509 = vst [vmem:[%s2028_s17 + $0x18] sm:$0xff] %v1067_v32   ;;  %1508 = vst [vmem:[%s2028_s17 + $0x10] sm:$0xff] %v1066_v34   ;;  %1619 = vmatprep.subr.bf16.mxu1 %v1069_v30 }
 0x232   : > { %1507 = vst [vmem:[%s2028_s17 + $0x8] sm:$0xff] %v1065_v35   ;;  %1471 = vst [vmem:[%s2028_s17] sm:$0xff] %v1064_v37  }
 0x234   : > { %1620 = vmatpush3.bf16.msra.mxu1 %v1069_v30 }
 0x235   : > { %1621 = vmatprep.subr.bf16.mxu1 %v1069_v30 }
 0x238   : > { %1622 = vmatpush3.bf16.msra.mxu1 %v1069_v30 }
 0x239   : > { %1623 = vmatprep.subr.bf16.mxu1 %v1068_v31 }
 0x23c   : > { %1624 = vmatpush3.bf16.msra.mxu1 %v1068_v31 }
 0x23d   : > { %1625 = vmatprep.subr.bf16.mxu1 %v1067_v32 }
 0x240   : > { %1626 = vmatpush3.bf16.msra.mxu1 %v1067_v32 }
 0x241   : > { %1627 = vmatprep.subr.bf16.mxu1 %v1066_v34 }
 0x244   : > { %1628 = vmatpush3.bf16.msra.mxu1 %v1066_v34 }
 0x245   : > { %1629 = vmatprep.subr.bf16.mxu1 %v1065_v35 }
 0x248   : > { %1630 = vmatpush3.bf16.msra.mxu1 %v1065_v35 }
 0x249   : > { %1631 = vmatprep.subr.bf16.mxu1 %v1064_v37 }
 0x24c   : > { %1632 = vmatpush3.bf16.msra.mxu1 %v1064_v37 }
 0x24f   : > { %1634 = vmatmul.mubr.bf16.vlgmr.msra.gmra.mxu1 %v1073_v53 }
 0x250   : > { %1759 = shalt.err (!%p1756_p5)
}
 0x251   : > { %s1760_s16 = scalar_lea.hbm %s2045_s21, 1024  ;;  %s1764_s19 = scalar_lea.hbm %s2134_s7, 2048 }
 0x252   : > { %p1761_p6 = scmp.ne.s32.totalorder %s2045_s21, %s1760_s16  ;;  %p1765_p10 = scmp.lt.s32.totalorder %s2045_s21, %s2134_s7 }
 0x253   : > { %p1766_p11 = scmp.lt.s32.totalorder %s1764_s19, %s1760_s16 }
 0x254   : > { %p1762_p7 = pnand %p1761_p6, %p1941_p4 }
 0x255   : > { %p1767_p12 = por %p1766_p11, %p1765_p10 }
 0x256   : > { %p1763_p9 = pneg %p1762_p7 }
 0x258   : > { %p1768_p13 = pnand %p1767_p12, %p1763_p9 }
 0x25a   : > { %1771 = shalt.err (!%p1768_p13)
}
 0x25b   : > { %s1856_s22 = smov 64   ;;  %s1857_s12 = smov 4  }
 0x25c   : > { %1639 = dma.vmem_to_hbm [thread:$0]  (%p1941_p4), %s2048_s23, 1024, %s2045_s21, %s1205_s30, %s1856_s22, %s1856_s22, %s1857_s12  }
 0x25d   : > { %s1377_s15 = sshll.u32 %s2025_s10, 5  ;;  %s1465_s18 = sshll.u32 %s1844_s27, 9 }
 0x25e   : > { %s329_s17 = scalar_lea.vmem [#allocation2], %s1377_s15  ;;  %s2080_s8 = scalar_lea.hbm %s2133_s6, %s1465_s18 }
 0x25f   : > { %s1219_s16 = sshll.u32 %s329_s17, 4  ;;  %s1200_s21 = scalar_lea.sflag [#allocation3], %s2025_s10  ;;  %s2075_s16 = int_to_ptr.vmem [resolvable:$true] %s1219_s16 }
 0x260   : > { %s1772_s23 = scalar_lea.vmem %s2075_s16, 512  ;;  %s1858_s27 = smov [#allocation2]  }
 0x261   : > { %p1773_p0 = scmp.ne.s32.totalorder %s2075_s16, %s1772_s23  ;;  %s1776_s30 = sshll.u32 %s1858_s27, 4  ;;  %s1777_s30 = int_to_ptr.vmem [resolvable:$false] %s1776_s30 }
 0x262   : > { %s1778_s22 = scalar_lea.vmem %s1777_s30, 1024  ;;  %p1779_p3 = scmp.lt.s32.totalorder %s2075_s16, %s1777_s30 }
 0x263   : > { %p1774_p1 = pnand %p1773_p0, %p1941_p4  ;;  %p1780_p5 = scmp.lt.s32.totalorder %s1778_s22, %s1772_s23 }
 0x265   : > { %p1775_p2 = pneg %p1774_p1  ;;  %p1781_p6 = por %p1780_p5, %p1779_p3 }
 0x267   : > { %p1782_p7 = pnand %p1781_p6, %p1775_p2 }
 0x30f   : > { %v1635_v50 = vpop.f32.mrf.mxu1 }
 0x310   : > { %1125 = vst [vmem:[%s329_s17 + $0x10] sm:$0xff] %v1635_v50 }
 0x311   : > { %v1108_v52 = vpop.f32.mrf.mxu1 }
 0x312   : > { %1123 = vst [vmem:[%s329_s17] sm:$0xff] %v1108_v52 }
 0x313   : > { %v1636_v53 = vpop.f32.mrf.mxu1 }
 0x314   : > { %1126 = vst [vmem:[%s329_s17 + $0x18] sm:$0xff] %v1636_v53 }
 0x315   : > { %v1111_v42 = vpop.f32.mrf.mxu1 }
 0x316   : > { %1124 = vst [vmem:[%s329_s17 + $0x8] sm:$0xff] %v1111_v42 }
 0x317   : > { %1785 = shalt.err (!%p1782_p7)
}
 0x318   : > { %s1786_s12 = scalar_lea.hbm %s2080_s8, 512  ;;  %s1790_s18 = scalar_lea.hbm %s2133_s6, 1024 }
 0x319   : > { %p1787_p9 = scmp.ne.s32.totalorder %s2080_s8, %s1786_s12  ;;  %p1791_p12 = scmp.lt.s32.totalorder %s2080_s8, %s2133_s6 }
 0x31a   : > { %p1792_p13 = scmp.lt.s32.totalorder %s1790_s18, %s1786_s12 }
 0x31b   : > { %p1788_p10 = pnand %p1787_p9, %p1941_p4 }
 0x31c   : > { %p1793_p0 = por %p1792_p13, %p1791_p12 }
 0x31d   : > { %p1789_p11 = pneg %p1788_p10 }
 0x31f   : > { %p1794_p1 = pnand %p1793_p0, %p1789_p11 }
 0x321   : > { %1797 = shalt.err (!%p1794_p1)
}
 0x322   : > { %s1859_s23 = smov 128   ;;  %s1860_s27 = smov 8  }
 0x323   : > { %1638 = dma.vmem_to_hbm [thread:$0]  (%p1941_p4), %s2075_s16, 512, %s2080_s8, %s1200_s21, %s1859_s23, %s1859_s23, %s1860_s27  }
 0x324 PF: > { %p1649_p2 = scmp.ge.s32.totalorder %s1852_s29, 2  ;;  %s1251_s30 = sand.u32 1, %s1832_s24  }
 0x325   : > { %s1252_s22 = scalar_lea.sflag [#allocation3], %s1251_s30 }
 0x326   : > { %p1643_p3 = pnand %p1649_p2, %p1948_p8 }
 0x328   : > { %p1644_p5 = pneg %p1643_p3 }
 0x32a   : > { %1823 = dma.done.wait (%p1644_p5), %s1252_s22, 512  }
 0x32b   : > { %1825 = vsyncadd (%p1644_p5), %s1252_s22, 4294966784  ;;  %s1261_s12 = scalar_lea.sflag [#allocation5], %s1251_s30 }
 0x32c   : > { %1827 = dma.done.wait (%p1644_p5), %s1261_s12, 1024  }
 0x32d   : > { %1829 = vsyncadd (%p1644_p5), %s1261_s12, 4294966272  ;;  %s24_s29 = sadd.s32 1, %s1852_s29   ;;  %s2137_s24 = smov %s1836_s25 }
 0x32e   : > { %p21_p6 = scmp.ge.s32.totalorder %s24_s29, 4   ;;  %s2138_s25 = smov %s1840_s26 }
 0x32f   : > { %s2139_s26 = smov %s1954_s14  ;;  %s2140_s27 = smov %s1848_s28 }
 0x330   : > { %s2141_s28 = smov %s2143_s9  ;;  %23 = sbr.rel (!%p21_p6) target bundleno = 6 (0x6), region = 102 }
 0x335   :  { %1266 = vsyncpa [#allocation3], 1 }
 0x336   :  { %1268 = vsyncpa [#allocation3 + $0x1], 1 }
 0x337   :  { %1269 = vsyncpa [#allocation5], 1 }
 0x338   :  { %1271 = vsyncpa [#allocation5 + $0x1], 1 }

</bundles_post_ra>
